<compile_context>
chip_gen: v6e
topology: v6e:2x2x1
jax: 0.10.0
libtpu: 0.0.40
codegen_flags: <defaults>
</compile_context>

<pallas_src>
import functools
import math

import numpy as np
import jax
import jax.numpy as jnp
from jax import lax
from jax.experimental import pallas as pl
from jax.experimental.pallas import tpu as pltpu

BN_EPS = 1e-5


def _round_up(x, m):
    return (x + m - 1) // m * m


def _cdiv(a, b):
    return -(-a // b)


def _pair_indices(num_fields):
    row, col = [], []
    for i in range(num_fields - 1):
        for j in range(i + 1, num_fields):
            row.append(i)
            col.append(j)
    return row, col


# ---------------------------------------------------------------------------
# Fused kernel: in-kernel embedding gather + roll-based pair products + MLP
# ---------------------------------------------------------------------------
def _ipnn_fused_kernel(num_fields, embed_dim, n_extra,
                       g_ref, emb2_ref, w1_ref, b1_ref, *rest):
    out_ref = rest[-1]
    layer_refs = rest[:-1]                       # (w, b) * n_extra, wo_row, bo

    F, D = num_fields, embed_dim
    FD = F * D
    bb = g_ref.shape[0]
    Vp = emb2_ref.shape[0]

    # ---- embedding gather on the MXU: multi-hot (0/1, exact in bf16) @ table ----
    # g holds global embedding rows (field offsets pre-added).  Each row of `mh`
    # has exactly one 1 per field (field vocab ranges are disjoint) and emb2 is
    # block-structured, so mh @ emb2 == x_emb.reshape(bb, F*D) exactly.
    g = g_ref[...]                                               # (bb, F) int32
    vocab_iota = lax.broadcasted_iota(jnp.int32, (bb, Vp), 1)
    mh = jnp.zeros((bb, Vp), jnp.bfloat16)
    for f in range(F):
        mh = mh + (vocab_iota == g[:, f:f + 1]).astype(jnp.bfloat16)
    x = jnp.dot(mh, emb2_ref[...], preferred_element_type=jnp.float32)   # (bb, FD) f32

    # ---- pairwise inner products via lane rolls (XLU) + VPU multiplies ----
    # rolled_k pairs field slot f with field (f +/- k) mod F; the sum over d and
    # the pair->hidden weights (with wrap-around slots zeroed) are folded into
    # w1_ref, so one matmul reproduces  concat([x_flat, cross]) @ W1  exactly.
    feats = [x.astype(jnp.bfloat16)]
    for k in range(1, F):
        rolled = pltpu.roll(x, FD - k * D, 1)
        feats.append((x * rolled).astype(jnp.bfloat16))
    feat = jnp.concatenate(feats, axis=1)                        # (bb, F*F*D) bf16

    # ---- MLP (BatchNorm folded into weights/biases; eval mode) ----
    h = jnp.dot(feat, w1_ref[...], preferred_element_type=jnp.float32) + b1_ref[...]
    h = jnp.maximum(h, 0.0)

    idx = 0
    for _ in range(n_extra):
        w_ref, b_ref = layer_refs[idx], layer_refs[idx + 1]
        idx += 2
        h = jnp.dot(h.astype(jnp.bfloat16), w_ref[...],
                    preferred_element_type=jnp.float32) + b_ref[...]
        h = jnp.maximum(h, 0.0)
        # TODO(synk): Dropout is identity in eval mode; training-mode dropout not implemented.

    wo_ref, bo_ref = layer_refs[idx], layer_refs[idx + 1]
    # Final H->1 layer as a VPU multiply + lane reduction (no N=1 MXU matmul);
    # keeps the output block narrow so the per-step output DMA stays tiny.
    out_ref[...] = jnp.sum(h * wo_ref[...], axis=1, keepdims=True) + bo_ref[...]


# ---------------------------------------------------------------------------
# Parameter init (deterministic, synthetic) — mirrors the torch module layout
# ---------------------------------------------------------------------------
def init_ipnn_params(key, field_dims, embed_dim, mlp_layers):
    num_fields = len(field_dims)
    inter_size = num_fields * (num_fields - 1) // 2
    in_dim = num_fields * embed_dim + inter_size

    keys = jax.random.split(key, 2 + len(mlp_layers))
    params = {}
    params["embedding"] = 0.1 * jax.random.normal(
        keys[0], (sum(field_dims), embed_dim), jnp.float32)

    hidden = []
    d = in_dim
    for li, h in enumerate(mlp_layers):
        w = jax.random.normal(keys[1 + li], (d, h), jnp.float32) / math.sqrt(d)
        b = jnp.zeros((1, h), jnp.float32)
        gamma = jnp.ones((1, h), jnp.float32)
        beta = jnp.zeros((1, h), jnp.float32)
        mean = jnp.zeros((1, h), jnp.float32)    # BN running mean (fresh init)
        var = jnp.ones((1, h), jnp.float32)      # BN running var  (fresh init)
        hidden.append((w, b, gamma, beta, mean, var))
        d = h
    params["hidden"] = hidden
    params["out_w"] = jax.random.normal(keys[-1], (d, 1), jnp.float32) / math.sqrt(d)
    params["out_b"] = jnp.zeros((1, 1), jnp.float32)
    return params


# ---------------------------------------------------------------------------
# Trace-time preparation: BN folding, roll-layout weight, block embedding table
# ---------------------------------------------------------------------------
def _fold_bn(w, b, gamma, beta, mean, var):
    scale = gamma * lax.rsqrt(var + BN_EPS)               # (1, H)  — exact in eval mode
    return w * scale, (b - mean) * scale + beta


def _roll_brings_higher_fields_down(FD, D):
    """Probe pltpu.roll direction once: True iff roll(x, FD-D)[:, m] == x[:, (m+D)%FD]."""
    def kernel(x_ref, o_ref):
        o_ref[...] = pltpu.roll(x_ref[...], FD - D, 1)
    x = jnp.broadcast_to(jnp.arange(FD, dtype=jnp.float32)[None, :], (8, FD))
    out = pl.pallas_call(kernel, out_shape=jax.ShapeDtypeStruct((8, FD), jnp.float32))(x)
    return bool(out[0, 0] == float(D % FD))


def build_fused_params(params, field_dims, embed_dim):
    F = len(field_dims)
    D = embed_dim
    FD = F * D
    P = F * (F - 1) // 2
    V = int(sum(field_dims))
    Vp = _round_up(V, 128)                                # lane-aligned vocab width
    row, col = _pair_indices(F)

    offsets = np.zeros((F,), np.int32)
    offsets[1:] = np.cumsum(np.asarray(field_dims[:-1], np.int64)).astype(np.int32)

    # Block-structured table: emb2[v, f*D:(f+1)*D] = embedding[v] iff v lies in
    # field f's vocab range, else 0  ->  multi_hot @ emb2 == x_emb.reshape(B, F*D).
    emb = np.asarray(params["embedding"], np.float32)
    emb2 = np.zeros((Vp, FD), np.float32)
    start = 0
    for f, fd in enumerate(field_dims):
        emb2[start:start + fd, f * D:(f + 1) * D] = emb[start:start + fd]
        start += fd

    hidden = params["hidden"]
    w1f, b1f = _fold_bn(*hidden[0])                       # (FD + P, H1), (1, H1)
    w1f = np.asarray(w1f, np.float32)
    H1 = w1f.shape[1]
    w1c = w1f[FD:]                                        # (P, H1) cross-product weights

    # Roll-layout first-layer weight:
    #   w1big = [ W1[:FD] ; W1_shift1 ; ... ; W1_shift(F-1) ]      (F*FD, H1)
    # where W1_shiftk's rows at field slot f carry w1c[pair] for the pair covered
    # by roll shift k at slot f, and are 0 for wrap-around slots.  Slot placement
    # depends on the hardware roll direction, probed once at build time.
    forward = _roll_brings_higher_fields_down(FD, D)
    w1big = np.zeros((F * FD, H1), np.float32)
    w1big[:FD] = w1f[:FD]
    for p in range(P):
        i, j = row[p], col[p]
        k = j - i
        f = i if forward else j
        w1big[k * FD + f * D: k * FD + (f + 1) * D, :] = w1c[p][None, :]

    rest = []
    for layer in hidden[1:]:
        wf, bf = _fold_bn(*layer)
        rest += [jnp.asarray(wf, jnp.bfloat16), jnp.asarray(bf, jnp.float32)]

    return dict(
        offsets=jnp.asarray(offsets),
        emb2=jnp.asarray(emb2, jnp.bfloat16),             # 0/1 gather of bf16 rows is exact
        w1=jnp.asarray(w1big, jnp.bfloat16),
        b1=jnp.asarray(b1f, jnp.float32),
        rest=rest,
        wo=jnp.asarray(np.asarray(params["out_w"], np.float32).reshape(1, -1)),  # (1, H) f32
        bo=jnp.asarray(params["out_b"], jnp.float32),      # (1, 1) f32
    )


# ---------------------------------------------------------------------------
# Full IPNN forward (single fused pallas_call, batch-gridded)
# ---------------------------------------------------------------------------
def ipnn_forward(x_idx, fused, block_b=1024):
    F = fused["offsets"].shape[0]
    D = fused["emb2"].shape[1] // F
    B = x_idx.shape[0]

    # Only ~32 B/row of indices cross HBM into the kernel — the gather runs inside.
    g = (x_idx.astype(jnp.int32) + fused["offsets"][None, :]).astype(jnp.int32)

    # Balanced batch tiles (multiple of 8); always >= 2 grid steps so both v7x
    # TensorCores get work under dimension_semantics=("parallel",).
    num_tiles = max(_cdiv(B, block_b), 2)
    bb = _round_up(_cdiv(B, num_tiles), 8)
    Bp = bb * num_tiles
    if Bp != B:
        g = jnp.pad(g, ((0, Bp - B), (0, 0)))             # index 0 is valid; rows sliced off

    weights = [fused["emb2"], fused["w1"], fused["b1"],
               *fused["rest"], fused["wo"], fused["bo"]]
    n_extra = len(fused["rest"]) // 2

    grid_spec = pltpu.PrefetchScalarGridSpec(
        num_scalar_prefetch=0,
        grid=(num_tiles,),
        in_specs=([pl.BlockSpec((bb, F), lambda i: (i, 0))]        # per-tile indices
                  + [pl.BlockSpec(w.shape, lambda i: (0, 0))       # weights stay resident
                     for w in weights]),
        out_specs=pl.BlockSpec((bb, 1), lambda i: (i, 0)),
    )

    out = pl.pallas_call(
        functools.partial(_ipnn_fused_kernel, F, D, n_extra),
        out_shape=jax.ShapeDtypeStruct((Bp, 1), jnp.float32),
        grid_spec=grid_spec,
        compiler_params=pltpu.CompilerParams(
            dimension_semantics=("parallel",),
            vmem_limit_bytes=32 * 1024 * 1024),
    )(g, *weights)
    return out[:B]


# ---------------------------------------------------------------------------
# Pure-JAX f32 reference (original, un-folded math) for correctness checking
# ---------------------------------------------------------------------------
def ipnn_reference(x_idx, params, field_dims, embed_dim):
    num_fields = len(field_dims)
    B = x_idx.shape[0]
    offsets = [0]
    for fd in field_dims[:-1]:
        offsets.append(offsets[-1] + fd)
    offsets = jnp.asarray(offsets, dtype=jnp.int32)
    x_emb = params["embedding"][x_idx + offsets[None, :]]
    row, col = _pair_indices(num_fields)
    cross = jnp.sum(x_emb[:, jnp.asarray(row)] * x_emb[:, jnp.asarray(col)], axis=2)
    h = jnp.concatenate([x_emb.reshape(B, num_fields * embed_dim), cross], axis=1)
    for (w, b, g, beta, mean, var) in params["hidden"]:
        y = h @ w + b
        y = (y - mean) * lax.rsqrt(var + BN_EPS) * g + beta
        h = jnp.maximum(y, 0.0)
    return h @ params["out_w"] + params["out_b"]


if __name__ == "__main__":
    field_dims = [7, 11, 13, 17, 19, 23, 29, 31]   # 8 fields -> F*D = 128, P = 28
    embed_dim = 16
    mlp_layers = (64, 64, 64)

    key = jax.random.PRNGKey(0)
    pkey, xkey = jax.random.split(key)
    params = init_ipnn_params(pkey, field_dims, embed_dim, mlp_layers)
    fused = build_fused_params(params, field_dims, embed_dim)

    fwd = jax.jit(ipnn_forward)

    # small batch (2 tiny tiles) and a larger batch (balanced 2x152 tiling)
    for batch in (4, 300):
        xkeys = jax.random.split(jax.random.fold_in(xkey, batch), len(field_dims))
        x_idx = jnp.stack(
            [jax.random.randint(k, (batch,), 0, fd) for k, fd in zip(xkeys, field_dims)],
            axis=1).astype(jnp.int32)                  # (B, F)

        out = jax.block_until_ready(fwd(x_idx, fused))
        ref = ipnn_reference(x_idx, params, field_dims, embed_dim)

        assert out.shape == (batch, 1), out.shape
        assert bool(jnp.all(jnp.isfinite(out)))
        assert bool(jnp.allclose(out, ref, rtol=5e-2, atol=5e-3)), (
            batch, float(jnp.max(jnp.abs(out - ref))))

    print("KERNEL_OK")
</pallas_src>

<mosaic_0001>
module attributes {stable_mosaic.version = 11 : i64} {
  func.func @kernel(%arg0: memref<8x128xf32, #tpu.memory_space<vmem>>, %arg1: memref<8x128xf32, #tpu.memory_space<vmem>>) attributes {dimension_semantics = [], scalar_prefetch = 0 : i64, scratch_operands = 0 : i64, tpu.core_type = #tpu.core_type<tc>} {
    %c0 = arith.constant 0 : index
    %c0_0 = arith.constant 0 : index
    %0 = vector.load %arg0[%c0, %c0_0] : memref<8x128xf32, #tpu.memory_space<vmem>>, vector<8x128xf32>
    %c112_i32 = arith.constant 112 : i32
    %1 = tpu.dynamic_rotate %0 by %c112_i32 dim 1 : vector<8x128xf32>, i32 -> vector<8x128xf32>
    %c0_1 = arith.constant 0 : index
    %c0_2 = arith.constant 0 : index
    %2 = vector.load %arg1[%c0_1, %c0_2] : memref<8x128xf32, #tpu.memory_space<vmem>>, vector<8x128xf32>
    tpu.vector_store %arg1[%c0_1, %c0_2], %1 {strides = array<i32>} : memref<8x128xf32, #tpu.memory_space<vmem>>, vector<8x128xf32>,
    return
  }
}

</mosaic_0001>

<bundles_post_ra>
// kernel: tpu_custom_call.1
= control target key start
LH: loop header
LB: loop body
LE: loop exit
PB: predicated region body
PF: predicated region fallthrough
CT: control target
= control target key end

     0   :  { %6 = vsyncpa [#allocation3], 0  ;;  %s106_s0 = inlined_call_operand.hbm [shape: f32[8,128], index: 0, kind: input, shape index: {}]   ;;  %s107_s1 = inlined_call_operand.hbm [shape: f32[8,128], index: 1, kind: output, shape index: {}]  }
   0x1   :  { %7 = vsyncpa [#allocation4], 0  ;;  %s87_s6 = smov [#allocation2]  }
   0x2   :  { %s14_s7 = sshll.u32 %s87_s6, 4  ;;  %s15_s7 = int_to_ptr.vmem [resolvable:$true] %s14_s7 }
   0x3   :  { %s51_s8 = scalar_lea.vmem %s15_s7, 128  ;;  %p56_p1 = scmp.lt.s32.totalorder %s15_s7, %s15_s7 }
   0x4   :  { %p52_p0 = scmp.ne.s32.totalorder %s15_s7, %s51_s8  ;;  %p57_p2 = scmp.lt.s32.totalorder %s51_s8, %s51_s8 }
   0x6   :  { %p58_p3 = por %p57_p2, %p56_p1 }
   0x8   :  { %p59_p4 = pnand %p58_p3, %p52_p0 }
   0xa   :  { %62 = shalt.err (!%p59_p4)
}
   0xb   :  { %17 = dma.hbm_to_vmem [thread:$0]  %s106_s0, 128, %s15_s7, [#allocation3]  }
   0xc   :  { %83 = dma.done.wait [#allocation3], 128  }
   0xd   :  { %84 = vsyncadd [#allocation3], 4294967168  ;;  %v21_v0 = vld [vmem:[#allocation2] sm:$0xff]  ;;  %s88_s11 = smov 112   ;;  %s89_s12 = smov [#allocation5]  }
   0xe   :  { %22 = vrot.lane.b32.xlu0 %v21_v0, %s88_s11  ;;  %s31_s13 = sshll.u32 %s89_s12, 4  ;;  %s32_s13 = int_to_ptr.vmem [resolvable:$true] %s31_s13 }
   0xf   :  { %s63_s14 = scalar_lea.vmem %s32_s13, 128  ;;  %p68_p6 = scmp.lt.s32.totalorder %s32_s13, %s32_s13 }
  0x10   :  { %p64_p5 = scmp.ne.s32.totalorder %s32_s13, %s63_s14  ;;  %p69_p7 = scmp.lt.s32.totalorder %s63_s14, %s63_s14 }
  0x12   :  { %p70_p8 = por %p69_p7, %p68_p6 }
  0x14   :  { %p71_p9 = pnand %p70_p8, %p64_p5 }
  0x80   :  { %v23_v1 = vpop.permute.xlu0 %22 }
  0x81   :  { %24 = vst [vmem:[#allocation5] sm:$0xff] %v23_v1 }
  0x82   :  { %74 = shalt.err (!%p71_p9)
}
  0x83   :  { %34 = dma.vmem_to_hbm [thread:$0]  %s32_s13, 128, %s107_s1, [#allocation4]  }
  0x84   :  { %85 = dma.done.wait [#allocation4], 128  }
  0x85   :  { %86 = vsyncadd [#allocation4], 4294967168 }
  0x86   :  { %38 = vsyncpa [#allocation3], 1 }
  0x87   :  { %39 = vsyncpa [#allocation4], 1 }

</bundles_post_ra>
